<compile_context>
chip_gen: v5e
topology: v5e:2x2
jax: 0.10.0
libtpu: 0.0.40
codegen_flags: <defaults>
</compile_context>

<pallas_src>
import jax
import jax.numpy as jnp
from jax import lax
from jax.experimental import pallas as pl
from jax.experimental.pallas import tpu as pltpu


# --------------------------------------------------------------------------- kernel


def _resblock_kernel(x_ref, t1_ref, t2_ref, bias_ref, out_ref, xslab_ref, mid_ref):
    # x_ref    : (B, H, W*Cin)            bf16  input slab (W,C collapsed on lanes)
    # t1_ref   : (3, (W+2)*Cin, 2*W*Cout) bf16  banded conv1 weight, BN1 scale folded;
    #            columns [W*Cout:] hold the fused 1x1-shortcut weights (dy=1 band).
    # t2_ref   : (3, (W+2)*Cout, W*Cout)  bf16  banded conv2 weight, BN2 scale folded.
    # bias_ref : (3, W*Cout) f32  rows = [BN1 bias | BN2 bias | shortcut-BN bias],
    #                             each pre-tiled to lane-dense slab width.
    # out_ref  : (B, H, W*Cout) f32  lane-dense output slab (W*Cout == 128 here).
    # xslab_ref: (B, H+2, (W+2)*Cin)  bf16 scratch -- zero-padded input slab
    # mid_ref  : (B, H+2, (W+2)*Cout) bf16 scratch -- zero-padded conv1 activation
    B, H, WCin = x_ref.shape
    WCout = t2_ref.shape[-1]

    b1 = bias_ref[0:1, :]
    b2 = bias_ref[1:2, :]
    bsc = bias_ref[2:3, :]

    # Zero-padded input slab: data occupies rows [1:H+1] and lanes [0:W*Cin]; row 0,
    # row H+1 and the trailing 2*Cin lanes are the pad=1 halo (the banded weights map
    # out-of-range taps onto those always-zero lanes).  One full-buffer zero store per
    # step (no masked strip writes); not program_id-gated, so it is safe with
    # "parallel" batch sharding on v7x.
    xslab_ref[...] = jnp.zeros(xslab_ref.shape, xslab_ref.dtype)
    for b in range(B):
        xslab_ref[b, 1:H + 1, 0:WCin] = x_ref[b]

    def banded_conv(src_ref, t_ref):
        # 3x3 conv (pad=1, stride=1) as 3 banded matmuls, one per dy row offset.
        acc = None
        for dy in range(3):
            if B > 1:
                rows = jnp.concatenate(
                    [src_ref[b, dy:dy + H, :] for b in range(B)], axis=0)
            else:
                rows = src_ref[0, dy:dy + H, :]
            part = jnp.dot(rows, t_ref[dy], preferred_element_type=jnp.float32)
            acc = part if acc is None else acc + part
        return acc                                       # (B*H, n_cols) f32

    # ---- conv1 (3x3, pad=1) + fused 1x1 shortcut: [y1 | sc] in one chain ----
    acc1 = banded_conv(xslab_ref, t1_ref)                # (B*H, 2*W*Cout)
    y1 = jnp.maximum(acc1[:, :WCout] + b1, 0.0)          # BN1 (scale in weights) + ReLU
    sc = acc1[:, WCout:] + bsc                           # shortcut BN

    # ---- stage conv1 activation (bf16) with zero halo for conv2's pad=1 ----
    mid_ref[...] = jnp.zeros(mid_ref.shape, mid_ref.dtype)
    for b in range(B):
        mid_ref[b, 1:H + 1, 0:WCout] = y1[b * H:(b + 1) * H].astype(mid_ref.dtype)

    # ---- conv2 (3x3, pad=1) ----
    acc2 = banded_conv(mid_ref, t2_ref)                  # (B*H, W*Cout)
    out = jnp.maximum(acc2 + b2 + sc, 0.0)               # BN2 + residual + final ReLU
    out_ref[...] = out.reshape(B, H, WCout).astype(out_ref.dtype)


# ------------------------------------------------------------------ wrapper & prep


def _banded_weight(w_taps_scaled, W, Cin, Cout, n_col_groups=1):
    """Block-Toeplitz ("banded") weight for a 3x3 / pad=1 / stride=1 conv over slabs.

    Slab layout per padded row r: lanes [w*Cin + ci], w in [0, W), hold the data;
    lanes [W*Cin : (W+2)*Cin] are always zero.  Then
        out[h, w*Cout + co] = sum_dy  slab[h+dy, :] @ T[dy, :, w*Cout + co]
    with T[dy, wp*Cin + ci, w*Cout + co] = w_taps[dy*3+dx, ci, co],
    wp = (w + dx - 1) mod (W+2); out-of-range taps (w+dx-1 in {-1, W}) land on the
    zero pad lanes, implementing the spatial padding for free.
    """
    Wp = W + 2
    T = jnp.zeros((3, Wp * Cin, n_col_groups * W * Cout), jnp.float32)
    for dy in range(3):
        for dx in range(3):
            tap = w_taps_scaled[dy * 3 + dx]             # (Cin, Cout)
            for w in range(W):
                wp = (w + dx - 1) % Wp
                T = T.at[dy, wp * Cin:(wp + 1) * Cin,
                         w * Cout:(w + 1) * Cout].set(tap)
    return T


def _prep_operands(params, W):
    """Fold BN scales into the conv weights (f32, then bf16), build banded weights with
    the 1x1 shortcut fused into conv1's extra output columns, pack lane-dense biases."""
    w1, s1, b1, w2, s2, b2, wsc, ssc, bsc = params
    Cin, Cout = w1.shape[1], w1.shape[2]

    w1s = (w1 * s1.reshape(1, 1, -1)).astype(jnp.float32)    # (9, Cin, Cout)
    w2s = (w2 * s2.reshape(1, 1, -1)).astype(jnp.float32)    # (9, Cout, Cout)
    wscs = (wsc * ssc.reshape(1, -1)).astype(jnp.float32)    # (Cin, Cout)

    t1 = _banded_weight(w1s, W, Cin, Cout, n_col_groups=2)   # (3, (W+2)*Cin, 2*W*Cout)
    # Fuse the 1x1 shortcut into the second half of conv1's output columns: it only
    # reads the center tap (dy=1, dx=1), i.e. slab lanes [w*Cin:(w+1)*Cin] of row h+1.
    for w in range(W):
        t1 = t1.at[1, w * Cin:(w + 1) * Cin,
                   W * Cout + w * Cout: W * Cout + (w + 1) * Cout].set(wscs)
    t2 = _banded_weight(w2s, W, Cout, Cout, n_col_groups=1)  # (3, (W+2)*Cout, W*Cout)

    tile = lambda v: jnp.tile(v.reshape(1, Cout), (1, W))    # -> lane-dense (1, W*Cout)
    bias = jnp.concatenate([tile(b1), tile(b2), tile(bsc)], axis=0).astype(jnp.float32)

    return t1.astype(jnp.bfloat16), t2.astype(jnp.bfloat16), bias


def _pick_batch_per_step(n, max_b=8):
    # Fold batch elements into one grid step (bigger matmul M, amortised ~0.35us/step
    # overhead) but keep the grid length >= 2 so both v7x TensorCores get work under
    # dimension_semantics=("parallel",).
    if n < 2:
        return 1
    best = 1
    for b in range(1, min(max_b, n) + 1):
        if n % b == 0 and n // b >= 2:
            best = b
    return best


def residual_block_pallas(x_nchw, params):
    """x_nchw: (N, Cin, H, W) float32.  Returns (N, Cout, H, W) float32."""
    N, Cin, H, W = x_nchw.shape
    Cout = params[0].shape[-1]

    t1, t2, bias = _prep_operands(params, W)

    # Cast to bf16 BEFORE the layout transpose (halves the transpose's HBM bytes),
    # then collapse (W, Cin) onto the lane axis.
    x_slab = jnp.transpose(x_nchw.astype(jnp.bfloat16), (0, 2, 3, 1)).reshape(N, H, W * Cin)

    B = _pick_batch_per_step(N)

    def _full(a):
        nd = a.ndim
        return pl.BlockSpec(a.shape, lambda n: (0,) * nd)

    # NOTE: W*Cout == 128 in this config, so the output store is a full-lane unmasked
    # slab; other shapes still work but fall back to partially masked stores.
    out_flat = pl.pallas_call(
        _resblock_kernel,
        out_shape=jax.ShapeDtypeStruct((N, H, W * Cout), jnp.float32),
        grid=(N // B,),
        in_specs=[
            pl.BlockSpec((B, H, W * Cin), lambda n: (n, 0, 0)),
            _full(t1), _full(t2), _full(bias),
        ],
        out_specs=pl.BlockSpec((B, H, W * Cout), lambda n: (n, 0, 0)),
        scratch_shapes=[
            pltpu.VMEM((B, H + 2, (W + 2) * Cin), jnp.bfloat16),   # padded input slab
            pltpu.VMEM((B, H + 2, (W + 2) * Cout), jnp.bfloat16),  # padded conv1 act.
        ],
        compiler_params=pltpu.CompilerParams(
            dimension_semantics=("parallel",),
            vmem_limit_bytes=32 * 1024 * 1024),
    )(x_slab, t1, t2, bias)

    out_nhwc = out_flat.reshape(N, H, W, Cout)
    return jnp.transpose(out_nhwc, (0, 3, 1, 2))        # back to NCHW


# ----------------------------------------------------------------------- reference


def _fold_bn(gamma, beta, mean, var, eps=1e-5):
    scale = gamma / jnp.sqrt(var + eps)
    bias = beta - mean * scale
    return scale.reshape(1, -1), bias.reshape(1, -1)


def _ref_forward(x_nchw, params):
    """Pure-JAX reference with the same quantization points as the kernel: BN scales
    folded into the weights in f32, weights / conv inputs in bf16, f32 accumulation,
    biases and ReLU in f32."""
    w1, s1, b1, w2, s2, b2, wsc, ssc, bsc = params
    Cin, Cout = w1.shape[1], w1.shape[2]
    x = jnp.transpose(x_nchw.astype(jnp.bfloat16), (0, 2, 3, 1))
    dn = ("NHWC", "HWIO", "NHWC")

    w1_hwio = (w1 * s1.reshape(1, 1, -1)).reshape(3, 3, Cin, Cout).astype(jnp.bfloat16)
    w2_hwio = (w2 * s2.reshape(1, 1, -1)).reshape(3, 3, Cout, Cout).astype(jnp.bfloat16)
    wsc_hwio = (wsc * ssc.reshape(1, -1)).reshape(1, 1, Cin, Cout).astype(jnp.bfloat16)

    y = lax.conv_general_dilated(x, w1_hwio, (1, 1), "SAME", dimension_numbers=dn,
                                 preferred_element_type=jnp.float32)
    y = jnp.maximum(y + b1.reshape(1, 1, 1, -1), 0.0)
    y = lax.conv_general_dilated(y.astype(jnp.bfloat16), w2_hwio, (1, 1), "SAME",
                                 dimension_numbers=dn,
                                 preferred_element_type=jnp.float32)
    y = y + b2.reshape(1, 1, 1, -1)

    sc = lax.conv_general_dilated(x, wsc_hwio, (1, 1), "SAME", dimension_numbers=dn,
                                  preferred_element_type=jnp.float32)
    sc = sc + bsc.reshape(1, 1, 1, -1)

    out = jnp.maximum(y + sc, 0.0)
    return jnp.transpose(out, (0, 3, 1, 2))


if __name__ == "__main__":
    key = jax.random.PRNGKey(0)
    N, Cin, Cout, H, W = 2, 4, 8, 16, 16  # inchannel != outchannel -> conv shortcut

    keys = jax.random.split(key, 12)
    x = jax.random.normal(keys[0], (N, Cin, H, W), jnp.float32)

    # conv weights stored as (9, Cin, Cout) taps (3x3 window flattened, tap = dy*3+dx)
    w1 = jax.random.normal(keys[1], (9, Cin, Cout), jnp.float32) * 0.1
    w2 = jax.random.normal(keys[2], (9, Cout, Cout), jnp.float32) * 0.1
    wsc = jax.random.normal(keys[3], (Cin, Cout), jnp.float32) * 0.1

    # BatchNorm params (inference / running stats), folded to scale+bias
    g1 = 1.0 + 0.1 * jax.random.normal(keys[4], (Cout,), jnp.float32)
    be1 = 0.1 * jax.random.normal(keys[5], (Cout,), jnp.float32)
    m1 = 0.1 * jax.random.normal(keys[6], (Cout,), jnp.float32)
    v1 = jnp.abs(jax.random.normal(keys[7], (Cout,), jnp.float32)) + 0.5
    g2 = 1.0 + 0.1 * jax.random.normal(keys[8], (Cout,), jnp.float32)
    be2 = 0.1 * jax.random.normal(keys[9], (Cout,), jnp.float32)
    m2 = 0.1 * jax.random.normal(keys[10], (Cout,), jnp.float32)
    v2 = jnp.abs(jax.random.normal(keys[11], (Cout,), jnp.float32)) + 0.5
    gsc = jnp.ones((Cout,), jnp.float32)
    besc = jnp.zeros((Cout,), jnp.float32)
    msc = jnp.zeros((Cout,), jnp.float32)
    vsc = jnp.ones((Cout,), jnp.float32)

    s1, b1 = _fold_bn(g1, be1, m1, v1)
    s2, b2 = _fold_bn(g2, be2, m2, v2)
    ssc, bsc = _fold_bn(gsc, besc, msc, vsc)

    params = (w1, s1, b1, w2, s2, b2, wsc, ssc, bsc)

    out = jax.jit(residual_block_pallas)(x, params)
    out = jax.block_until_ready(out)

    ref = _ref_forward(x, params)
    assert out.shape == (N, Cout, H, W)
    assert jnp.allclose(out, ref, atol=2e-3, rtol=2e-3), "mismatch vs JAX reference"

    print("KERNEL_OK")
</pallas_src>

<mosaic_0001>
module attributes {stable_mosaic.version = 11 : i64} {
  func.func @_resblock_kernel(%arg0: i32, %arg1: memref<1x16x64xbf16, #tpu.memory_space<vmem>>, %arg2: memref<3x72x256xbf16, #tpu.memory_space<vmem>>, %arg3: memref<3x144x128xbf16, #tpu.memory_space<vmem>>, %arg4: memref<3x128xf32, #tpu.memory_space<vmem>>, %arg5: memref<1x16x128xf32, #tpu.memory_space<vmem>>, %arg6: memref<1x18x72xbf16, #tpu.memory_space<vmem>>, %arg7: memref<1x18x144xbf16, #tpu.memory_space<vmem>>) attributes {dimension_semantics = [#tpu.dimension_semantics<parallel>], iteration_bounds = array<i64: 2>, scalar_prefetch = 0 : i64, scratch_operands = 2 : i64, tpu.core_type = #tpu.core_type<tc>, window_params = [{transform_indices = @transform_0, window_bounds = array<i64: 1, 16, 64>}, {pipeline_mode = #tpu.pipeline_mode<synchronous>, transform_indices = @transform_1, window_bounds = array<i64: 3, 72, 256>}, {pipeline_mode = #tpu.pipeline_mode<synchronous>, transform_indices = @transform_2, window_bounds = array<i64: 3, 144, 128>}, {pipeline_mode = #tpu.pipeline_mode<synchronous>, transform_indices = @transform_3, window_bounds = array<i64: 3, 128>}, {transform_indices = @transform_4, window_bounds = array<i64: 1, 16, 128>}]} {
    %c0 = arith.constant 0 : index
    %c0_0 = arith.constant 0 : index
    %0 = vector.load %arg4[%c0, %c0_0] : memref<3x128xf32, #tpu.memory_space<vmem>>, vector<1x128xf32>
    %c1 = arith.constant 1 : index
    %c0_1 = arith.constant 0 : index
    %1 = vector.load %arg4[%c1, %c0_1] : memref<3x128xf32, #tpu.memory_space<vmem>>, vector<1x128xf32>
    %c2 = arith.constant 2 : index
    %c0_2 = arith.constant 0 : index
    %2 = vector.load %arg4[%c2, %c0_2] : memref<3x128xf32, #tpu.memory_space<vmem>>, vector<1x128xf32>
    %cst = arith.constant 0.000000e+00 : bf16
    %3 = vector.broadcast %cst : bf16 to vector<1x18x72xbf16>
    %c0_3 = arith.constant 0 : index
    %c0_4 = arith.constant 0 : index
    %c0_5 = arith.constant 0 : index
    %4 = vector.load %arg6[%c0_3, %c0_4, %c0_5] : memref<1x18x72xbf16, #tpu.memory_space<vmem>>, vector<1x18x72xbf16>
    tpu.vector_store %arg6[%c0_3, %c0_4, %c0_5], %3 {strides = array<i32>} : memref<1x18x72xbf16, #tpu.memory_space<vmem>>, vector<1x18x72xbf16>,
    %c0_6 = arith.constant 0 : index
    %c0_7 = arith.constant 0 : index
    %c0_8 = arith.constant 0 : index
    %5 = vector.load %arg1[%c0_6, %c0_7, %c0_8] : memref<1x16x64xbf16, #tpu.memory_space<vmem>>, vector<1x16x64xbf16>
    %6 = vector.shape_cast %5 : vector<1x16x64xbf16> to vector<16x64xbf16>
    %c0_9 = arith.constant 0 : index
    %c1_10 = arith.constant 1 : index
    %c0_11 = arith.constant 0 : index
    %7 = vector.load %arg6[%c0_9, %c1_10, %c0_11] : memref<1x18x72xbf16, #tpu.memory_space<vmem>>, vector<1x16x64xbf16>
    %8 = vector.shape_cast %7 : vector<1x16x64xbf16> to vector<16x64xbf16>
    %9 = vector.shape_cast %6 : vector<16x64xbf16> to vector<1x16x64xbf16>
    tpu.vector_store %arg6[%c0_9, %c1_10, %c0_11], %9 {strides = array<i32>} : memref<1x18x72xbf16, #tpu.memory_space<vmem>>, vector<1x16x64xbf16>,
    %c0_12 = arith.constant 0 : index
    %c0_13 = arith.constant 0 : index
    %c0_14 = arith.constant 0 : index
    %10 = vector.load %arg6[%c0_12, %c0_13, %c0_14] : memref<1x18x72xbf16, #tpu.memory_space<vmem>>, vector<1x16x72xbf16>
    %11 = vector.shape_cast %10 : vector<1x16x72xbf16> to vector<16x72xbf16>
    %c0_15 = arith.constant 0 : index
    %c0_16 = arith.constant 0 : index
    %c0_17 = arith.constant 0 : index
    %12 = vector.load %arg2[%c0_15, %c0_16, %c0_17] : memref<3x72x256xbf16, #tpu.memory_space<vmem>>, vector<1x72x256xbf16>
    %13 = vector.shape_cast %12 : vector<1x72x256xbf16> to vector<72x256xbf16>
    %cst_18 = arith.constant dense<0.000000e+00> : vector<16x256xf32>
    %14 = tpu.matmul %11, %13, %cst_18 {dimension_numbers = #tpu.dot_dimension_numbers<[1], [0], [0], [1], [0, 0, 1, 1], [], []>} : vector<16x72xbf16>, vector<72x256xbf16>, vector<16x256xf32> -> vector<16x256xf32>
    %c0_19 = arith.constant 0 : index
    %c1_20 = arith.constant 1 : index
    %c0_21 = arith.constant 0 : index
    %15 = vector.load %arg6[%c0_19, %c1_20, %c0_21] : memref<1x18x72xbf16, #tpu.memory_space<vmem>>, vector<1x16x72xbf16>
    %16 = vector.shape_cast %15 : vector<1x16x72xbf16> to vector<16x72xbf16>
    %c1_22 = arith.constant 1 : index
    %c0_23 = arith.constant 0 : index
    %c0_24 = arith.constant 0 : index
    %17 = vector.load %arg2[%c1_22, %c0_23, %c0_24] : memref<3x72x256xbf16, #tpu.memory_space<vmem>>, vector<1x72x256xbf16>
    %18 = vector.shape_cast %17 : vector<1x72x256xbf16> to vector<72x256xbf16>
    %cst_25 = arith.constant dense<0.000000e+00> : vector<16x256xf32>
    %19 = tpu.matmul %16, %18, %cst_25 {dimension_numbers = #tpu.dot_dimension_numbers<[1], [0], [0], [1], [0, 0, 1, 1], [], []>} : vector<16x72xbf16>, vector<72x256xbf16>, vector<16x256xf32> -> vector<16x256xf32>
    %20 = arith.addf %14, %19 : vector<16x256xf32>
    %c0_26 = arith.constant 0 : index
    %c2_27 = arith.constant 2 : index
    %c0_28 = arith.constant 0 : index
    %21 = vector.load %arg6[%c0_26, %c2_27, %c0_28] : memref<1x18x72xbf16, #tpu.memory_space<vmem>>, vector<1x16x72xbf16>
    %22 = vector.shape_cast %21 : vector<1x16x72xbf16> to vector<16x72xbf16>
    %c2_29 = arith.constant 2 : index
    %c0_30 = arith.constant 0 : index
    %c0_31 = arith.constant 0 : index
    %23 = vector.load %arg2[%c2_29, %c0_30, %c0_31] : memref<3x72x256xbf16, #tpu.memory_space<vmem>>, vector<1x72x256xbf16>
    %24 = vector.shape_cast %23 : vector<1x72x256xbf16> to vector<72x256xbf16>
    %cst_32 = arith.constant dense<0.000000e+00> : vector<16x256xf32>
    %25 = tpu.matmul %22, %24, %cst_32 {dimension_numbers = #tpu.dot_dimension_numbers<[1], [0], [0], [1], [0, 0, 1, 1], [], []>} : vector<16x72xbf16>, vector<72x256xbf16>, vector<16x256xf32> -> vector<16x256xf32>
    %26 = arith.addf %20, %25 : vector<16x256xf32>
    %27 = vector.extract_strided_slice %26 {offsets = [0, 0], sizes = [16, 128], strides = [1, 1]} : vector<16x256xf32> to vector<16x128xf32>
    %28 = vector.broadcast %0 : vector<1x128xf32> to vector<16x128xf32>
    %29 = arith.addf %27, %28 : vector<16x128xf32>
    %cst_33 = arith.constant 0.000000e+00 : f32
    %30 = vector.broadcast %cst_33 : f32 to vector<16x128xf32>
    %31 = arith.maximumf %29, %30 : vector<16x128xf32>
    %32 = vector.extract_strided_slice %26 {offsets = [0, 128], sizes = [16, 128], strides = [1, 1]} : vector<16x256xf32> to vector<16x128xf32>
    %33 = vector.broadcast %2 : vector<1x128xf32> to vector<16x128xf32>
    %34 = arith.addf %32, %33 : vector<16x128xf32>
    %cst_34 = arith.constant 0.000000e+00 : bf16
    %35 = vector.broadcast %cst_34 : bf16 to vector<1x18x144xbf16>
    %c0_35 = arith.constant 0 : index
    %c0_36 = arith.constant 0 : index
    %c0_37 = arith.constant 0 : index
    %36 = vector.load %arg7[%c0_35, %c0_36, %c0_37] : memref<1x18x144xbf16, #tpu.memory_space<vmem>>, vector<1x18x144xbf16>
    tpu.vector_store %arg7[%c0_35, %c0_36, %c0_37], %35 {strides = array<i32>} : memref<1x18x144xbf16, #tpu.memory_space<vmem>>, vector<1x18x144xbf16>,
    %37 = arith.truncf %31 : vector<16x128xf32> to vector<16x128xbf16>
    %c0_38 = arith.constant 0 : index
    %c1_39 = arith.constant 1 : index
    %c0_40 = arith.constant 0 : index
    %38 = vector.load %arg7[%c0_38, %c1_39, %c0_40] : memref<1x18x144xbf16, #tpu.memory_space<vmem>>, vector<1x16x128xbf16>
    %39 = vector.shape_cast %38 : vector<1x16x128xbf16> to vector<16x128xbf16>
    %40 = vector.shape_cast %37 : vector<16x128xbf16> to vector<1x16x128xbf16>
    tpu.vector_store %arg7[%c0_38, %c1_39, %c0_40], %40 {strides = array<i32>} : memref<1x18x144xbf16, #tpu.memory_space<vmem>>, vector<1x16x128xbf16>,
    %c0_41 = arith.constant 0 : index
    %c0_42 = arith.constant 0 : index
    %c0_43 = arith.constant 0 : index
    %41 = vector.load %arg7[%c0_41, %c0_42, %c0_43] : memref<1x18x144xbf16, #tpu.memory_space<vmem>>, vector<1x16x144xbf16>
    %42 = vector.shape_cast %41 : vector<1x16x144xbf16> to vector<16x144xbf16>
    %c0_44 = arith.constant 0 : index
    %c0_45 = arith.constant 0 : index
    %c0_46 = arith.constant 0 : index
    %43 = vector.load %arg3[%c0_44, %c0_45, %c0_46] : memref<3x144x128xbf16, #tpu.memory_space<vmem>>, vector<1x144x128xbf16>
    %44 = vector.shape_cast %43 : vector<1x144x128xbf16> to vector<144x128xbf16>
    %cst_47 = arith.constant dense<0.000000e+00> : vector<16x128xf32>
    %45 = tpu.matmul %42, %44, %cst_47 {dimension_numbers = #tpu.dot_dimension_numbers<[1], [0], [0], [1], [0, 0, 1, 1], [], []>} : vector<16x144xbf16>, vector<144x128xbf16>, vector<16x128xf32> -> vector<16x128xf32>
    %c0_48 = arith.constant 0 : index
    %c1_49 = arith.constant 1 : index
    %c0_50 = arith.constant 0 : index
    %46 = vector.load %arg7[%c0_48, %c1_49, %c0_50] : memref<1x18x144xbf16, #tpu.memory_space<vmem>>, vector<1x16x144xbf16>
    %47 = vector.shape_cast %46 : vector<1x16x144xbf16> to vector<16x144xbf16>
    %c1_51 = arith.constant 1 : index
    %c0_52 = arith.constant 0 : index
    %c0_53 = arith.constant 0 : index
    %48 = vector.load %arg3[%c1_51, %c0_52, %c0_53] : memref<3x144x128xbf16, #tpu.memory_space<vmem>>, vector<1x144x128xbf16>
    %49 = vector.shape_cast %48 : vector<1x144x128xbf16> to vector<144x128xbf16>
    %cst_54 = arith.constant dense<0.000000e+00> : vector<16x128xf32>
    %50 = tpu.matmul %47, %49, %cst_54 {dimension_numbers = #tpu.dot_dimension_numbers<[1], [0], [0], [1], [0, 0, 1, 1], [], []>} : vector<16x144xbf16>, vector<144x128xbf16>, vector<16x128xf32> -> vector<16x128xf32>
    %51 = arith.addf %45, %50 : vector<16x128xf32>
    %c0_55 = arith.constant 0 : index
    %c2_56 = arith.constant 2 : index
    %c0_57 = arith.constant 0 : index
    %52 = vector.load %arg7[%c0_55, %c2_56, %c0_57] : memref<1x18x144xbf16, #tpu.memory_space<vmem>>, vector<1x16x144xbf16>
    %53 = vector.shape_cast %52 : vector<1x16x144xbf16> to vector<16x144xbf16>
    %c2_58 = arith.constant 2 : index
    %c0_59 = arith.constant 0 : index
    %c0_60 = arith.constant 0 : index
    %54 = vector.load %arg3[%c2_58, %c0_59, %c0_60] : memref<3x144x128xbf16, #tpu.memory_space<vmem>>, vector<1x144x128xbf16>
    %55 = vector.shape_cast %54 : vector<1x144x128xbf16> to vector<144x128xbf16>
    %cst_61 = arith.constant dense<0.000000e+00> : vector<16x128xf32>
    %56 = tpu.matmul %53, %55, %cst_61 {dimension_numbers = #tpu.dot_dimension_numbers<[1], [0], [0], [1], [0, 0, 1, 1], [], []>} : vector<16x144xbf16>, vector<144x128xbf16>, vector<16x128xf32> -> vector<16x128xf32>
    %57 = arith.addf %51, %56 : vector<16x128xf32>
    %58 = vector.broadcast %1 : vector<1x128xf32> to vector<16x128xf32>
    %59 = arith.addf %57, %58 : vector<16x128xf32>
    %60 = arith.addf %59, %34 : vector<16x128xf32>
    %cst_62 = arith.constant 0.000000e+00 : f32
    %61 = vector.broadcast %cst_62 : f32 to vector<16x128xf32>
    %62 = arith.maximumf %60, %61 : vector<16x128xf32>
    %63 = vector.shape_cast %62 : vector<16x128xf32> to vector<1x16x128xf32>
    %c0_63 = arith.constant 0 : index
    %c0_64 = arith.constant 0 : index
    %c0_65 = arith.constant 0 : index
    %64 = vector.load %arg5[%c0_63, %c0_64, %c0_65] : memref<1x16x128xf32, #tpu.memory_space<vmem>>, vector<1x16x128xf32>
    tpu.vector_store %arg5[%c0_63, %c0_64, %c0_65], %63 {strides = array<i32>} : memref<1x16x128xf32, #tpu.memory_space<vmem>>, vector<1x16x128xf32>,
    return
  }
  func.func @transform_0(%arg0: i32) -> (i32, i32, i32) {
    %c0_i32 = arith.constant 0 : i32
    %c0_i32_0 = arith.constant 0 : i32
    %c0_i32_1 = arith.constant 0 : i32
    return %arg0, %c0_i32, %c0_i32_0 : i32, i32, i32
  }
  func.func @transform_1(%arg0: i32) -> (i32, i32, i32) {
    %c0_i32 = arith.constant 0 : i32
    %c0_i32_0 = arith.constant 0 : i32
    %c0_i32_1 = arith.constant 0 : i32
    %c0_i32_2 = arith.constant 0 : i32
    return %c0_i32, %c0_i32_0, %c0_i32_1 : i32, i32, i32
  }
  func.func @transform_2(%arg0: i32) -> (i32, i32, i32) {
    %c0_i32 = arith.constant 0 : i32
    %c0_i32_0 = arith.constant 0 : i32
    %c0_i32_1 = arith.constant 0 : i32
    %c0_i32_2 = arith.constant 0 : i32
    return %c0_i32, %c0_i32_0, %c0_i32_1 : i32, i32, i32
  }
  func.func @transform_3(%arg0: i32) -> (i32, i32) {
    %c0_i32 = arith.constant 0 : i32
    %c0_i32_0 = arith.constant 0 : i32
    %c0_i32_1 = arith.constant 0 : i32
    return %c0_i32, %c0_i32_0 : i32, i32
  }
  func.func @transform_4(%arg0: i32) -> (i32, i32, i32) {
    %c0_i32 = arith.constant 0 : i32
    %c0_i32_0 = arith.constant 0 : i32
    %c0_i32_1 = arith.constant 0 : i32
    return %arg0, %c0_i32, %c0_i32_0 : i32, i32, i32
  }
}

</mosaic_0001>

<bundles_post_ra>
// kernel: residual_block_pallas.1
= control target key start
LH: loop header
LB: loop body
LE: loop exit
PB: predicated region body
PF: predicated region fallthrough
CT: control target
= control target key end

     0   :  { %s1422_s15 = smov 0   ;;  %s1757_s0 = inlined_call_operand.vmem [shape: bf16[2,16,64], index: 0, kind: input, shape index: {}]   ;;  %s1758_s1 = inlined_call_operand.vmem [shape: bf16[3,72,256], index: 1, kind: input, shape index: {}]   ;;  %s1759_s2 = inlined_call_operand.vmem [shape: bf16[3,144,128], index: 2, kind: input, shape index: {}]   ;;  %s1760_s3 = inlined_call_operand.vmem [shape: f32[3,128], index: 3, kind: input, shape index: {}]   ;;  %s1761_s4 = inlined_call_operand.vmem [shape: f32[2,16,128], index: 4, kind: output, shape index: {}]  }
   0x1 LB: > { %s1038_s16 = sadd.s32 4294967295, %s1394_s15   ;;  %p1042_p0 = scmp.ge.s32.totalorder %s1394_s15, 1  ;;  %s1394_s15 = sphi %s1422_s15, %s14_s15  }
   0x2   : > { %p162_p1 = scmp.lt.s32.totalorder %s1394_s15, 3 }
   0x4   : > { %p163_p2 = pnand %p1042_p0, %p162_p1 }
   0x5   : > { %p188_p3 = scmp.lt.s32.totalorder (!%p163_p2), %s1038_s16, 1 }
   0x6   : > { %166 = sbr.rel (%p163_p2) target bundleno = 399 (0x18f), region = 36 }
   0xb   : > { %v1433_v0 = vld [vmem:[%s1758_s1 + $0x40] sm:$0xff]  ;;  %v1439_v2 = vld [vmem:[%s1758_s1 + $0x88] sm:$0xff]  ;;  %vm337_vm0 = vcmask 1043456   ;;  %v1116_v5 = vld [vmem:[%s1758_s1 + $0x30] sm:$0xf]  ;;  %s1767_s16 = smov (!%p188_p3, %s1038_s16), 1 }
   0xc   : > { %v397_v1 = vunpack.c.l.b16 %v1433_v0  ;;  %v313_v3 = vunpack.c.l.b16 %v1439_v2  ;;  %v1325_v6 = vld [vmem:[%s1758_s1 + $0x34] sm:$0xf0]  ;;  %v1333_v9 = vld [vmem:[%s1758_s1 + $0x7c] sm:$0xf0]  ;;  %vm202_vm1 = vcmask 584704   ;;  %v1396_v15 = vmov 0  }
   0xd   : > { %v1082_v8 = vld [vmem:[%s1758_s1 + $0x78] sm:$0xf]  ;;  %v1108_v11 = vld [vmem:[%s1758_s1 + $0x20] sm:$0xf]  ;;  %v1117_v12 = vor.u32 %v1325_v6, %v1116_v5  ;;  %v1323_v14 = vld [vmem:[%s1758_s1 + $0x24] sm:$0xf0]  ;;  %v314_v58 = vunpack.c.h.b16 %v1439_v2 }
   0xe   : > { %v407_v4 = vpack.c.b16 %v397_v1, %v397_v1  ;;  %v323_v7 = vpack.c.b16 %v313_v3, %v313_v3  ;;  %203 = vst.msk [vmem:[#allocation2] sm:$0xf] %vm202_vm1, %v1396_v15  ;;  %v1083_v16 = vor.u32 %v1333_v9, %v1082_v8  ;;  %v1074_v17 = vld [vmem:[%s1758_s1 + $0x68] sm:$0xf]  ;;  %s1316_s9 = sshll.u32 %s1767_s16, 3  ;;  %v1109_v19 = vor.u32 %v1323_v14, %v1108_v11  ;;  %v1485_v28 = vld [vmem:[%s1758_s1 + $0xd0] sm:$0xff] }
   0xf   : > { %204 = vst.msk [vmem:[#allocation2 + $0x4] sm:$0xf] %vm202_vm1, %v1396_v15  ;;  %v1331_v18 = vld [vmem:[%s1758_s1 + $0x6c] sm:$0xf0]  ;;  %s192_s14 = scalar_lea.vmem %s1757_s0, %s1316_s9  ;;  %vm210_vm2 = vsmask.f32 4368  ;;  %v496_v37 = vunpack.c.l.b16 %v1485_v28  ;;  %v324_v59 = vpack.c.b16 %v314_v58, %v314_v58 }
  0x10   : > { %v420_v10 = vsel %vm337_vm0, %v407_v4, 0  ;;  %v339_v13 = vsel %vm337_vm0, %v323_v7, 0  ;;  %vm233_vm3 = vsmask.f32 7938  ;;  %v1100_v20 = vld [vmem:[%s1758_s1 + $0x10] sm:$0xf]  ;;  %v1075_v29 = vor.u32 %v1331_v18, %v1074_v17 }
  0x11   : > { %428 = vmatpush.bf16.msra.mxu2 %v420_v10  ;;  %347 = vmatpush.bf16.msra.mxu0 %v339_v13  ;;  %v1321_v21 = vld [vmem:[%s1758_s1 + $0x14] sm:$0xf0]  ;;  %v207_v22 = vld [vmem:[%s192_s14] sm:$0xf]  ;;  %v208_v23 = vld [vmem:[%s192_s14 + $0x4] sm:$0xf]  ;;  %v506_v50 = vpack.c.b16 %v496_v37, %v496_v37 }
  0x12   : > { %vm232_vm4 = vcmask 519168   ;;  %vm205_vm5 = vcmask 581632   ;;  %v213_v24 = vshrl.u32 %v207_v22, 16  ;;  %v216_v25 = vshll.u32 %v207_v22, 16  ;;  %v1066_v30 = vld [vmem:[%s1758_s1 + $0x58] sm:$0xf] }
  0x13   : > { %v221_v26 = vshrl.u32 %v208_v23, 16  ;;  %v224_v27 = vshll.u32 %v208_v23, 16  ;;  %vm209_vm6 = vsmask.f32 256  ;;  %206 = vst.msk [vmem:[#allocation2 + $0x8] sm:$0x1] %vm205_vm5, %v1396_v15  ;;  %vm1502_vm9 = vmand %vm232_vm4, %vm233_vm3  ;;  %v1101_v38 = vor.u32 %v1321_v21, %v1100_v20 }
  0x14   : > { %v1329_v31 = vld [vmem:[%s1758_s1 + $0x5c] sm:$0xf0]  ;;  %vm1496_vm7 = vmor %vm209_vm6, %vm210_vm2  ;;  %v215_v33 = vrot.slane %v213_v24, 7  ;;  %vm240_vm8 = vcmask 516096   ;;  %v1319_v40 = vld [vmem:[%s1758_s1 + $0x4] sm:$0xf0] }
  0x15   : > { %429 = vmatpush.bf16.msra.mxu2 %v1117_v12  ;;  %348 = vmatpush.bf16.msra.mxu0 %v1083_v16  ;;  %v223_v34 = vrot.slane %v221_v26, 7  ;;  %v235_v36 = vld [vmem:[#allocation2] sm:$0xf]  ;;  %v1067_v44 = vor.u32 %v1329_v31, %v1066_v30  ;;  %vm241_vm10 = vmand %vm240_vm8, %vm209_vm6  ;;  %v1058_v46 = vld [vmem:[%s1758_s1 + $0x48] sm:$0xf]  ;;  %v520_v55 = vsel %vm337_vm0, %v506_v50, 0 }
  0x16   : > { %v1092_v39 = vld [vmem:[%s1758_s1] sm:$0xf]  ;;  %v218_v41 = vor.u32 %v216_v25, %v215_v33  ;;  %v219_v42 = vrot.slane %v215_v33, 4  ;;  %v1327_v49 = vld [vmem:[%s1758_s1 + $0x4c] sm:$0xf0]  ;;  %vm333_vm11 = vcmask 588800   ;;  %vm596_vm5 = vmand %vm337_vm0, %vm233_vm3 }
  0x17   : > { %v226_v43 = vor.u32 %v224_v27, %v223_v34  ;;  %v228_v45 = vrot.slane %v223_v34, 4  ;;  %v1093_v51 = vor.u32 %v1319_v40, %v1092_v39  ;;  %v1059_v53 = vor.u32 %v1327_v49, %v1058_v46  ;;  %v1159_v56 = vld [vmem:[%s1758_s1 + $0xc0] sm:$0xf]  ;;  %v1341_v57 = vld [vmem:[%s1758_s1 + $0xc4] sm:$0xf0]  ;;  %s1317_s13 = sshll.u32 %s1767_s16, 4 }
  0x18   : > { %v236_v48 = vsel %vm1502_vm9, %v218_v41, %v235_v36  ;;  %v1332_v60 = vld [vmem:[%s1758_s1 + $0x7c] sm:$0xf]  ;;  %v1084_v61 = vld [vmem:[%s1758_s1 + $0x80] sm:$0xf0]  ;;  %v1160_v62 = vor.u32 %v1341_v57, %v1159_v56  ;;  %v1151_v1 = vld [vmem:[%s1758_s1 + $0xb0] sm:$0xf]  ;;  %v497_v39 = vunpack.c.h.b16 %v1485_v28  ;;  %s197_s18 = scalar_lea.vmem %s1761_s4, %s1317_s13 }
  0x19   : > { %430 = vmatpush.bf16.msra.mxu2 %v1109_v19  ;;  %349 = vmatpush.bf16.msra.mxu0 %v1075_v29  ;;  %v227_v47 = vsel %vm1496_vm7, %v219_v42, %v226_v43  ;;  %237 = vst [vmem:[#allocation2] sm:$0xf] %v236_v48  ;;  %v1339_v2 = vld [vmem:[%s1758_s1 + $0xb4] sm:$0xf0]  ;;  %v342_v3 = vsel %vm337_vm0, %v324_v59, 0  ;;  %v1087_v5 = vor.u32 %v1332_v60, %v1084_v61  ;;  %vm467_vm13 = vcmask 1046528  }
  0x1a   : > { %239 = vst.msk [vmem:[#allocation2 + $0x4] sm:$0xf] %vm232_vm4, %v227_v47  ;;  %v242_v52 = vld [vmem:[#allocation2 + $0x8] sm:$0x1]  ;;  %361 = vmatpush.bf16.msra.mxu1 %v342_v3  ;;  %v1330_v7 = vld [vmem:[%s1758_s1 + $0x6c] sm:$0xf]  ;;  %v1152_v12 = vor.u32 %v1339_v2, %v1151_v1  ;;  %v507_v41 = vpack.c.b16 %v497_v39, %v497_v39  ;;  %v398_v47 = vunpack.c.h.b16 %v1433_v0 }
  0x1b   : > { %v243_v54 = vsel %vm241_vm10, %v228_v45, %v242_v52  ;;  %v1076_v8 = vld [vmem:[%s1758_s1 + $0x70] sm:$0xf0]  ;;  %v1143_v13 = vld [vmem:[%s1758_s1 + $0xa0] sm:$0xf]  ;;  %v1337_v14 = vld [vmem:[%s1758_s1 + $0xa4] sm:$0xf0] }
  0x1c   : > { %244 = vst [vmem:[#allocation2 + $0x8] sm:$0x1] %v243_v54  ;;  %v1079_v17 = vor.u32 %v1330_v7, %v1076_v8  ;;  %v1144_v20 = vor.u32 %v1337_v14, %v1143_v13  ;;  %vm275_vm12 = vsmask.f32 7424  ;;  %v1135_v21 = vld [vmem:[%s1758_s1 + $0x90] sm:$0xf]  ;;  %v408_v49 = vpack.c.b16 %v398_v47, %v398_v47 }
  0x1d   : > { %431 = vmatpush.bf16.msra.mxu2 %v1101_v38  ;;  %350 = vmatpush.bf16.msra.mxu0 %v1067_v44  ;;  %v1335_v22 = vld [vmem:[%s1758_s1 + $0x94] sm:$0xf0]  ;;  %v1328_v34 = vld [vmem:[%s1758_s1 + $0x5c] sm:$0xf]  ;;  %v1068_v35 = vld [vmem:[%s1758_s1 + $0x60] sm:$0xf0] }
  0x1e   : > { %362 = vmatpush.bf16.msra.mxu1 %v1087_v5  ;;  %v1136_v25 = vor.u32 %v1335_v22, %v1135_v21  ;;  %v1071_v36 = vor.u32 %v1328_v34, %v1068_v35  ;;  %v1326_v37 = vld [vmem:[%s1758_s1 + $0x4c] sm:$0xf]  ;;  %v1060_v38 = vld [vmem:[%s1758_s1 + $0x50] sm:$0xf0]  ;;  %v523_v42 = vsel %vm337_vm0, %v507_v41, 0  ;;  %v423_v50 = vsel %vm337_vm0, %v408_v49, 0 }
  0x1f   : > { %v1063_v40 = vor.u32 %v1326_v37, %v1060_v38  ;;  %v1340_v43 = vld [vmem:[%s1758_s1 + $0xc4] sm:$0xf]  ;;  %v1161_v44 = vld [vmem:[%s1758_s1 + $0xc8] sm:$0xf0]  ;;  %v1338_v28 = vld [vmem:[%s1758_s1 + $0xb4] sm:$0xf]  ;;  %442 = vmatpush.bf16.msra.mxu3 %v423_v50 }
  0x20   : > { %v1374_v27 = vld [vmem:[#allocation2] sm:$0xe]  ;;  %v1164_v45 = vor.u32 %v1340_v43, %v1161_v44  ;;  %v1153_v46 = vld [vmem:[%s1758_s1 + $0xb8] sm:$0xf0]  ;;  %v1145_v52 = vld [vmem:[%s1758_s1 + $0xa8] sm:$0xf0] }
  0x21   : > { %432 = vmatpush.bf16.msra.mxu2 %v1093_v51  ;;  %351 = vmatpush.bf16.msra.mxu0 %v1059_v53  ;;  %v1539_v63 = vld [vmem:[#allocation2] sm:$0xff]   ;;  %v1156_v48 = vor.u32 %v1338_v28, %v1153_v46  ;;  %v1324_v0 = vld [vmem:[%s1758_s1 + $0x34] sm:$0xf]  ;;  %v1118_v54 = vld [vmem:[%s1758_s1 + $0x38] sm:$0xf0]  ;;  %vm565_vm14 = vcmask 130052  }
  0x22   : > { %v279_v4 = vshll.u32 %v1539_v63, 16  ;;  %v277_v9 = vshrl.u32 %v1539_v63, 16  ;;  %363 = vmatpush.bf16.msra.mxu1 %v1079_v17  ;;  %v1373_v26 = vld [vmem:[#allocation2] sm:$0xf0]  ;;  %v1334_v56 = vld [vmem:[%s1758_s1 + $0x94] sm:$0xf]  ;;  %vm566_vm15 = vmor %vm565_vm14, %vm337_vm0 }
  0x23   : > { %v256_v6 = vld [vmem:[#allocation2 + $0x8] sm:$0x1]  ;;  %v1375_v29 = vor.u32 %v1374_v27, %v1373_v26  ;;  %v1336_v51 = vld [vmem:[%s1758_s1 + $0xa4] sm:$0xf]  ;;  %v1137_v57 = vld [vmem:[%s1758_s1 + $0x98] sm:$0xf0] }
  0x24   : > { %1122 = vmatmul.msk.bf16.vlgmr.msra.gmra.mxu2 %vm333_vm11, %v1539_v63  ;;  %v281_v10 = vrot.slane %v279_v4, 1  ;;  %v272_v11 = vunpack.c.l.b16 %v256_v6  ;;  %v1148_v53 = vor.u32 %v1336_v51, %v1145_v52  ;;  %v1140_v58 = vor.u32 %v1334_v56, %v1137_v57  ;;  %v1322_v59 = vld [vmem:[%s1758_s1 + $0x24] sm:$0xf]  ;;  %v1110_v60 = vld [vmem:[%s1758_s1 + $0x28] sm:$0xf0]  ;;  %567 = vst.msk [vmem:[#allocation3] sm:$0xff] %vm566_vm15, %v1396_v15 }
  0x25   : > { %528 = vmatpush.bf16.msrb.mxu0 %v520_v55  ;;  %v468_v30 = vrot.slane %v1375_v29, 1  ;;  %v1121_v55 = vor.u32 %v1324_v0, %v1118_v54  ;;  %v1113_v61 = vor.u32 %v1322_v59, %v1110_v60  ;;  %568 = vst.msk [vmem:[#allocation3 + $0x8] sm:$0xff] %vm566_vm15, %v1396_v15  ;;  %v1320_v1 = vld [vmem:[%s1758_s1 + $0x14] sm:$0xf]  ;;  %v1102_v2 = vld [vmem:[%s1758_s1 + $0x18] sm:$0xf0] }
  0x26   : > { %v274_v16 = vpack.c.b16 %v272_v11, %v272_v11  ;;  %v282_v18 = vor.u32 %v281_v10, %v277_v9  ;;  %364 = vmatpush.bf16.msra.mxu1 %v1071_v36  ;;  %v1105_v3 = vor.u32 %v1320_v1, %v1102_v2  ;;  %v1358_v4 = vld [vmem:[%s1759_s2 + $0x80] sm:$0xff]  ;;  %vm569_vm1 = vcmask 1040384   ;;  %v1094_v7 = vld [vmem:[%s1758_s1 + $0x8] sm:$0xf0]  ;;  %v1357_v8 = vld [vmem:[%s1759_s2 + $0x78] sm:$0xff] }
  0x27   : > { %443 = vmatpush.bf16.msra.mxu3 %v1121_v55  ;;  %v1366_v5 = vld [vmem:[%s1759_s2 + $0xc0] sm:$0xff]  ;;  %vm570_vm2 = vcmask 126980   ;;  %742 = vmatpush.bf16.msrb.mxu2 %v1358_v4  ;;  %v1365_v9 = vld [vmem:[%s1759_s2 + $0xb8] sm:$0xff]  ;;  %v1355_v13 = vld [vmem:[%s1759_s2 + $0x68] sm:$0xff]  ;;  %vm738_vm3 = vcmask 130048  }
  0x28   : > { %v284_v19 = vshll.u32 %v274_v16, 16  ;;  %v469_v31 = vrot.slane %v274_v16, 1  ;;  %vm571_vm4 = vmor %vm570_vm2, %vm569_vm1  ;;  %v1318_v6 = vld [vmem:[%s1758_s1 + $0x4] sm:$0xf]  ;;  %v1363_v14 = vld [vmem:[%s1759_s2 + $0xa8] sm:$0xff] }
  0x29   : > { %529 = vmatpush.bf16.msrb.mxu0 %v1160_v62  ;;  %v1367_v62 = vld [vmem:[%s1759_s2 + $0xc8] sm:$0xff]  ;;  %572 = vst.msk [vmem:[#allocation3 + $0x10] sm:$0x11] %vm571_vm4, %v1396_v15  ;;  %v1097_v11 = vor.u32 %v1318_v6, %v1094_v7  ;;  %v1356_v15 = vld [vmem:[%s1759_s2 + $0x70] sm:$0xff]  ;;  %v1350_v21 = vld [vmem:[%s1759_s2 + $0x40] sm:$0xff] }
  0x2a   : > { %v286_v23 = vrot.slane %v284_v19, 1  ;;  %v470_v33 = vsel %vm467_vm13, %v468_v30, %v469_v31  ;;  %365 = vmatpush.bf16.msra.mxu1 %v1063_v40  ;;  %v1359_v17 = vld [vmem:[%s1759_s2 + $0x88] sm:$0xff]  ;;  %v1348_v22 = vld [vmem:[%s1759_s2 + $0x30] sm:$0xff]  ;;  %v1385_v26 = vld [vmem:[%s1760_s3] ss:$0 sm:$0xff] }
  0x2b   : > { %444 = vmatpush.bf16.msra.mxu3 %v1113_v61  ;;  %743 = vmatpush.bf16.msrb.mxu2 %v1357_v8  ;;  %v1347_v29 = vld [vmem:[%s1759_s2 + $0x28] sm:$0xff]  ;;  %v1352_v31 = vld [vmem:[%s1759_s2 + $0x50] sm:$0xff]  ;;  %v1346_v40 = vld [vmem:[%s1759_s2 + $0x20] sm:$0xff] }
  0x2c   : > { %v287_v24 = vsel %vm275_vm12, %v282_v18, %v286_v23  ;;  %v1349_v18 = vld [vmem:[%s1759_s2 + $0x38] sm:$0xff]  ;;  %v1360_v34 = vld [vmem:[%s1759_s2 + $0x90] sm:$0xff]  ;;  %v1351_v39 = vld [vmem:[%s1759_s2 + $0x48] sm:$0xff] }
  0x2d   : > { %530 = vmatpush.bf16.msrb.mxu0 %v1152_v12  ;;  %1089 = vmatmul.msk.bf16.vlgmr.msra.gmra.mxu1 %vm333_vm11, %v287_v24  ;;  %v1364_v12 = vld [vmem:[%s1759_s2 + $0xb0] sm:$0xff]  ;;  %v1353_v23 = vld [vmem:[%s1759_s2 + $0x58] sm:$0xff]  ;;  %v597_v47 = vld [vmem:[#allocation3] sm:$0xf] }
  0x2e   : > { %1088 = vmatmul.msk.bf16.vlgmr.msra.gmra.mxu0 %vm333_vm11, %v287_v24  ;;  %542 = vmatpush.bf16.msrb.mxu1 %v523_v42  ;;  %v1361_v24 = vld [vmem:[%s1759_s2 + $0x98] sm:$0xff]  ;;  %v1344_v51 = vld [vmem:[%s1759_s2 + $0x10] sm:$0xff]  ;;  %v1343_v54 = vld [vmem:[%s1759_s2 + $0x8] sm:$0xff] }
  0x2f   : > { %445 = vmatpush.bf16.msra.mxu3 %v1105_v3  ;;  %744 = vmatpush.bf16.msrb.mxu2 %v1356_v15  ;;  %v1345_v46 = vld [vmem:[%s1759_s2 + $0x18] sm:$0xff]  ;;  %vm602_vm0 = vmand %vm569_vm1, %vm209_vm6  ;;  %v1342_v61 = vld [vmem:[%s1759_s2] sm:$0xff] }
  0x30   : > { %v603_v57 = vld [vmem:[#allocation3 + $0x10] sm:$0x1] }
  0x31   : > { %531 = vmatpush.bf16.msrb.mxu0 %v1144_v20  ;;  %v1362_v20 = vld [vmem:[%s1759_s2 + $0xa0] sm:$0xff] }
  0x32   : > { %543 = vmatpush.bf16.msrb.mxu1 %v1164_v45 }
  0x33   : > { %446 = vmatpush.bf16.msra.mxu3 %v1097_v11  ;;  %745 = vmatpush.bf16.msrb.mxu2 %v1355_v13 }
  0x35   : > { %532 = vmatpush.bf16.msrb.mxu0 %v1136_v25 }
  0x36   : > { %544 = vmatpush.bf16.msrb.mxu1 %v1156_v48  ;;  %1123 = vmatmul.msk.bf16.vlgmr.msra.gmra.mxu3 %vm333_vm11, %v1539_v63  ;;  %v1354_v63 = vld [vmem:[%s1759_s2 + $0x60] sm:$0xff]  ;;  %v1368_v48 = vld [vmem:[%s1759_s2 + $0xd0] sm:$0xff] }
  0x37   : > { %763 = vmatpush.bf16.msrb.mxu3 %v1359_v17  ;;  %746 = vmatpush.bf16.msrb.mxu2 %v1354_v63 }
  0x39   : > { %848 = vmatpush.bf16.msra.mxu0 %v1350_v21 }
  0x3a   : > { %545 = vmatpush.bf16.msrb.mxu1 %v1148_v53 }
  0x3b   : > { %827 = vmatpush.bf16.msra.mxu3 %v1349_v18  ;;  %747 = vmatpush.bf16.msrb.mxu2 %v1353_v23 }
  0x3e   : > { %1165 = vmatmul.msk.bf16.vlgmr.msrb.gmra.mxu0 %vm333_vm11, %v470_v33  ;;  %546 = vmatpush.bf16.msrb.mxu1 %v1140_v58 }
  0x3f   : > { %828 = vmatpush.bf16.msra.mxu3 %v1348_v22  ;;  %748 = vmatpush.bf16.msrb.mxu2 %v1352_v31 }
  0x41   : > { %1166 = vmatmul.msk.bf16.vlgmr.msrb.gmra.mxu1 %vm333_vm11, %v470_v33 }
  0x42   : > { %944 = vmatpush.bf16.msra.mxu1 %v1367_v62 }
  0x43   : > { %829 = vmatpush.bf16.msra.mxu3 %v1347_v29  ;;  %749 = vmatpush.bf16.msrb.mxu2 %v1351_v39 }
  0x46   : > { %945 = vmatpush.bf16.msra.mxu1 %v1366_v5 }
  0x47   : > { %830 = vmatpush.bf16.msra.mxu3 %v1346_v40  ;;  %965 = vmatpush.bf16.msra.mxu2 %v1368_v48 }
  0x4a   : > { %946 = vmatpush.bf16.msra.mxu1 %v1365_v9 }
  0x4b   : > { %831 = vmatpush.bf16.msra.mxu3 %v1345_v46 }
  0x4e   : > { %947 = vmatpush.bf16.msra.mxu1 %v1364_v12 }
  0x4f   : > { %832 = vmatpush.bf16.msra.mxu3 %v1344_v51 }
  0x52   : > { %948 = vmatpush.bf16.msra.mxu1 %v1363_v14 }
  0x53   : > { %833 = vmatpush.bf16.msra.mxu3 %v1343_v54 }
  0x56   : > { %949 = vmatpush.bf16.msra.mxu1 %v1362_v20 }
  0x57   : > { %834 = vmatpush.bf16.msra.mxu3 %v1342_v61 }
  0x5a   : > { %950 = vmatpush.bf16.msra.mxu1 %v1361_v24 }
  0x5e   : > { %951 = vmatpush.bf16.msra.mxu1 %v1360_v34 }
  0xa7   : > { %v434_v19 = vpop.f32.mrf.mxu2 }
  0xaa   : > { %v367_v40 = vpop.f32.mrf.mxu1 }
  0xab   : > { %v353_v10 = vpop.f32.mrf.mxu0 }
  0xac   : > { %v435_v25 = vadd.f32 %v434_v19, %v353_v10 }
  0xaf   : > { %v436_v35 = vpop.f32.mrf.mxu2 }
  0xb3   : > { %v355_v16 = vpop.f32.mrf.mxu0 }
  0xb4   : > { %v437_v37 = vadd.f32 %v436_v35, %v355_v16 }
  0xbb   : > { %v534_v27 = vpop.f32.mrf.mxu0 }
  0xbc   : > { %v553_v30 = vadd.f32 %v534_v27, %v435_v25 }
  0xbe   : > { %v558_v33 = vadd.f32 %v1385_v26, %v553_v30 }
  0xc0   : > { %v560_v36 = vmax.f32 %v558_v33, 0.0 }
  0xc2   : > { %v573_v38 = vpack.c.bf16 %v560_v36, %v560_v36 }
  0xc3   : > { %v536_v41 = vpop.f32.mrf.mxu0 }
  0xc4   : > { %v576_v42 = vshrl.u32 %v573_v38, 16  ;;  %v555_v43 = vadd.f32 %v536_v41, %v437_v37  ;;  %v579_v45 = vshll.u32 %v573_v38, 16  ;;  %v448_v41 = vpop.f32.mrf.mxu3 }
  0xc6   : > { %v578_v44 = vrot.slane %v576_v42, 7  ;;  %v559_v28 = vadd.f32 %v1385_v26, %v555_v43  ;;  %v369_v42 = vpop.f32.mrf.mxu1 }
  0xc8   : > { %v581_v49 = vor.u32 %v579_v45, %v578_v44  ;;  %v561_v50 = vmax.f32 %v559_v28, 0.0  ;;  %v582_v58 = vrot.slane %v578_v44, 4 }
  0xca   : > { %v598_v52 = vsel %vm596_vm5, %v581_v49, %v597_v47  ;;  %v574_v53 = vpack.c.bf16 %v561_v50, %v561_v50  ;;  %v449_v49 = vadd.f32 %v448_v41, %v367_v40 }
  0xcb   : > { %599 = vst [vmem:[#allocation3] sm:$0xf] %v598_v52 }
  0xcc   : > { %v584_v0 = vshrl.u32 %v574_v53, 16  ;;  %v587_v56 = vshll.u32 %v574_v53, 16  ;;  %v450_v43 = vpop.f32.mrf.mxu3 }
  0xce   : > { %v586_v55 = vrot.slane %v584_v0, 7  ;;  %v548_v44 = vpop.f32.mrf.mxu1 }
  0xd0   : > { %v589_v59 = vor.u32 %v587_v56, %v586_v55  ;;  %v591_v60 = vrot.slane %v586_v55, 4  ;;  %v554_v55 = vadd.f32 %v548_v44, %v449_v49  ;;  %v1386_v56 = vld [vmem:[%s1760_s3 + $0x2] ss:$0 sm:$0xff] }
  0xd2   : > { %v590_v62 = vsel %vm1496_vm7, %v582_v58, %v589_v59  ;;  %v604_v1 = vsel %vm602_vm0, %v591_v60, %v603_v57  ;;  %v606_v2 = vld [vmem:[#allocation3] sm:$0xff]  ;;  %v1387_v59 = vld [vmem:[%s1760_s3 + $0x1] ss:$0 sm:$0xff]  ;;  %v563_v61 = vadd.f32 %v1386_v56, %v554_v55 }
  0xd3   : > { %600 = vst [vmem:[#allocation3 + $0x8] sm:$0xf] %v590_v62  ;;  %v855_v3 = vld [vmem:[#allocation3] sm:$0xee]  ;;  %v650_v5 = vunpack.c.h.b16 %v606_v2  ;;  %v649_v8 = vunpack.c.l.b16 %v606_v2  ;;  %v451_v62 = vadd.f32 %v450_v43, %v369_v42 }
  0xd4   : > { %605 = vst [vmem:[#allocation3 + $0x10] sm:$0x1] %v604_v1  ;;  %v876_v10 = vunpack.c.l.b16 %v855_v3  ;;  %v877_v35 = vunpack.c.h.b16 %v855_v3 }
  0xd6   : > { %v550_v46 = vpop.f32.mrf.mxu1 }
  0xda   : > { %v607_v4 = vld [vmem:[#allocation3 + $0x8] sm:$0xff] }
  0xdb   : > { %v652_v6 = vunpack.c.h.b16 %v607_v4  ;;  %v626_v7 = vld [vmem:[#allocation3 + $0x10] sm:$0x11]  ;;  %v651_v9 = vunpack.c.l.b16 %v607_v4 }
  0xdc   : > { %v653_v11 = vunpack.c.l.b16 %v626_v7  ;;  %v654_v15 = vunpack.c.h.b16 %v626_v7 }
  0xdd   : > { %v656_v12 = vpack.c.b16 %v652_v6, %v650_v5  ;;  %v655_v13 = vpack.c.b16 %v651_v9, %v649_v8  ;;  %v878_v32 = vpack.c.b16 %v651_v9, %v876_v10  ;;  %v879_v36 = vpack.c.b16 %v652_v6, %v877_v35 }
  0xde   : > { %v657_v14 = vpack.c.b16 %v653_v11, %v653_v11  ;;  %v658_v16 = vpack.c.b16 %v654_v15, %v654_v15  ;;  %v556_v9 = vadd.f32 %v550_v46, %v451_v62 }
  0xdf   : > { %1258 = vmatmul.msk.bf16.vlgmr.msra.gmra.mxu0 %vm738_vm3, %v656_v12  ;;  %v880_v17 = vrot.slane %v878_v32, 1  ;;  %v662_v63 = vshll.u32 %v655_v13, 16  ;;  %v674_v20 = vshll.u32 %v656_v12, 16  ;;  %v660_v22 = vshrl.u32 %v655_v13, 16 }
  0xe0   : > { %v881_v18 = vrot.slane %v657_v14, 1  ;;  %v667_v19 = vshll.u32 %v657_v14, 16  ;;  %v679_v21 = vshll.u32 %v658_v16, 16  ;;  %v672_v25 = vshrl.u32 %v656_v12, 16 }
  0xe1   : > { %v664_v23 = vrot.slane %v662_v63, 1  ;;  %v676_v26 = vrot.slane %v674_v20, 1  ;;  %v883_v37 = vrot.slane %v879_v36, 1  ;;  %v884_v38 = vrot.slane %v658_v16, 1 }
  0xe2   : > { %v882_v24 = vsel %vm467_vm13, %v880_v17, %v881_v18  ;;  %v669_v29 = vrot.slane %v667_v19, 1  ;;  %v681_v31 = vrot.slane %v679_v21, 1 }
  0xe3   : > { %952 = vmatmul.bf16.vlgmr.msra.gmra.mxu1 %v882_v24  ;;  %v665_v27 = vor.u32 %v664_v23, %v660_v22  ;;  %v677_v30 = vor.u32 %v676_v26, %v672_v25  ;;  %v885_v39 = vsel %vm467_vm13, %v883_v37, %v884_v38 }
  0xe5   : > { %v670_v33 = vsel %vm275_vm12, %v665_v27, %v669_v29  ;;  %v682_v34 = vsel %vm275_vm12, %v677_v30, %v681_v31 }
  0xe6   : > { %750 = vmatmul.bf16.vlgmr.msrb.gmra.mxu2 %v670_v33  ;;  %1221 = vmatmul.msk.bf16.vlgmr.msrb.gmra.mxu3 %vm738_vm3, %v682_v34 }
  0xf6   : > { %1313 = vmatmul.msk.bf16.vlgmr.msra.gmra.mxu2 %vm738_vm3, %v885_v39  ;;  %835 = vmatmul.bf16.vlgmr.msra.gmra.mxu3 %v655_v13  ;;  %v564_v13 = vadd.f32 %v1386_v56, %v556_v9 }
 0x15c   : > { %v850_v50 = vpop.f32.mrf.mxu0 }
 0x160   : > { %v953_v53 = vpop.f32.mrf.mxu1 }
 0x164   : > { %v852_v7 = vpop.f32.mrf.mxu0 }
 0x168   : > { %v955_v8 = vpop.f32.mrf.mxu1 }
 0x169   : > { %v751_v45 = vpop.f32.mrf.mxu2  ;;  %v765_v28 = vpop.f32.mrf.mxu3 }
 0x16a   : > { %v766_v51 = vadd.f32 %v765_v28, %v751_v45 }
 0x171   : > { %v753_v47 = vpop.f32.mrf.mxu2  ;;  %v767_v48 = vpop.f32.mrf.mxu3 }
 0x172   : > { %v768_v1 = vadd.f32 %v767_v48, %v753_v47 }
 0x179   : > { %v967_v52 = vpop.f32.mrf.mxu2  ;;  %v836_v0 = vpop.f32.mrf.mxu3 }
 0x17a   : > { %v837_v54 = vadd.f32 %v836_v0, %v766_v51  ;;  %v968_v58 = vadd.f32 %v967_v52, %v953_v53 }
 0x17c   : > { %v851_v57 = vadd.f32 %v850_v50, %v837_v54 }
 0x17e   : > { %v972_v60 = vadd.f32 %v968_v58, %v851_v57 }
 0x180   : > { %v975_v2 = vadd.f32 %v1387_v59, %v972_v60 }
 0x181   : > { %v838_v3 = vpop.f32.mrf.mxu3  ;;  %v969_v4 = vpop.f32.mrf.mxu2 }
 0x182   : > { %v977_v5 = vadd.f32 %v975_v2, %v563_v61  ;;  %v839_v6 = vadd.f32 %v838_v3, %v768_v1  ;;  %v970_v15 = vadd.f32 %v969_v4, %v955_v8 }
 0x184   : > { %v979_v10 = vmax.f32 %v977_v5, 0.0  ;;  %v853_v11 = vadd.f32 %v852_v7, %v839_v6 }
 0x186   : > { %981 = vst [vmem:[%s197_s18] sm:$0xff] %v979_v10  ;;  %v973_v12 = vadd.f32 %v970_v15, %v853_v11 }
 0x188   : > { %v976_v32 = vadd.f32 %v1387_v59, %v973_v12 }
 0x18a   : > { %v978_v14 = vadd.f32 %v976_v32, %v564_v13 }
 0x18c   : > { %v980_v16 = vmax.f32 %v978_v14, 0.0 }
 0x18e   : > { %982 = vst [vmem:[%s197_s18 + $0x8] sm:$0xff] %v980_v16 }
 0x18f PF: > { %s14_s15 = sadd.s32 1, %s1394_s15  }
 0x190   : > { %p11_p4 = scmp.ge.s32.totalorder %s14_s15, 4  }
 0x192   :  { %13 = sbr.rel (!%p11_p4) target bundleno = 1 (0x1), region = 70 }

</bundles_post_ra>
